<compile_context>
chip_gen: v7x
topology: tpu7x:2x2x1
jax: 0.10.0
libtpu: 0.0.40
codegen_flags: <defaults>
</compile_context>

<pallas_src>
import functools

import jax
import jax.numpy as jnp
from jax.experimental import pallas as pl
from jax.experimental.pallas import tpu as pltpu


# --------------------------------------------------------------------------
# pltpu.roll direction probe (robustness guard: the kernel works under either
# rotate convention; resolved once on the host, outside jit).
# --------------------------------------------------------------------------
_ROLL_LIKE_JNP = None


def _roll_like_jnp() -> bool:
    global _ROLL_LIKE_JNP
    if _ROLL_LIKE_JNP is None:
        x = jnp.arange(8 * 128, dtype=jnp.float32).reshape(8, 128)

        def probe(x_ref, o_ref):
            o_ref[...] = pltpu.roll(x_ref[...], 1, axis=1)

        y = pl.pallas_call(
            probe, out_shape=jax.ShapeDtypeStruct((8, 128), jnp.float32)
        )(x)
        # jnp.roll convention: y[:, 1] == x[:, 0]
        _ROLL_LIKE_JNP = bool(y[0, 1] == x[0, 0])
    return _ROLL_LIKE_JNP


# --------------------------------------------------------------------------
# Fused CAB kernel: one grid step = one batch element, all heads.
# --------------------------------------------------------------------------
def _cab_fused_kernel(
    x_ref, y_ref, masks_ref,
    wq_ref, bq_ref, wqdw_ref, bqdw_ref,
    wk_ref, bk_ref, wkdw_ref, bkdw_ref,
    wv_ref, bv_ref, wvdw_ref, bvdw_ref,
    wp_ref, bp_ref, trow_ref, hmask_ref,
    o_ref,
    *, H, W, roll_like_jnp, matmul_dtype,
):
    HW = H * W

    xf = x_ref[0]          # (C, HW)  -- NCHW slab, HW on lanes (lane dense)
    yf = y_ref[0]          # (C, HW)

    # Boundary-validity masks for the 3x3 depthwise conv (precomputed, (1, HW)).
    rt = masks_ref[0:1, :]     # row > 0       (needed when di == -1)
    rb = masks_ref[1:2, :]     # row < H - 1   (needed when di == +1)
    cl = masks_ref[2:3, :]     # col > 0       (needed when dj == -1)
    cr = masks_ref[3:4, :]     # col < W - 1   (needed when dj == +1)

    def mm(a, b):              # a @ b, f32 accumulate on the MXU
        return jnp.dot(a.astype(matmul_dtype), b.astype(matmul_dtype),
                       preferred_element_type=jnp.float32)

    def mm_nt(a, b):           # a @ b.T (contraction over lanes), f32 accumulate
        return jax.lax.dot_general(
            a.astype(matmul_dtype), b.astype(matmul_dtype),
            (((1,), (1,)), ((), ())), preferred_element_type=jnp.float32)

    def shift_plus(u, s):
        # returns r with r[:, p] = u[:, (p + s) % HW]   (circular; masked later)
        if s == 0:
            return u
        amt = (-s) % HW if roll_like_jnp else s % HW
        return pltpu.roll(u, amt, axis=1)

    def dwconv3x3(u, wdw, bdw):
        # u: (Cc, HW) flattened image, wdw: (Cc, 9), bdw: (Cc, 1)
        acc = jnp.zeros(u.shape, jnp.float32)
        for di in (-1, 0, 1):
            for dj in (-1, 0, 1):
                t = (di + 1) * 3 + (dj + 1)
                sh = shift_plus(u, di * W + dj)
                if di == -1:
                    sh = sh * rt
                elif di == 1:
                    sh = sh * rb
                if dj == -1:
                    sh = sh * cl
                elif dj == 1:
                    sh = sh * cr
                acc = acc + wdw[:, t:t + 1] * sh
        return acc + bdw

    # ---- q / k / v paths: 1x1 conv (MXU) + depthwise 3x3, VMEM resident ----
    q = dwconv3x3(mm(wq_ref[...], xf) + bq_ref[...], wqdw_ref[...], bqdw_ref[...])
    k = dwconv3x3(mm(wk_ref[...], yf) + bk_ref[...], wkdw_ref[...], bkdw_ref[...])
    v = dwconv3x3(mm(wv_ref[...], yf) + bv_ref[...], wvdw_ref[...], bvdw_ref[...])

    # ---- channel attention, all heads at once (block-diagonal softmax) ----
    qn = q * jax.lax.rsqrt(jnp.maximum(jnp.sum(q * q, axis=-1, keepdims=True), 1e-24))
    kn = k * jax.lax.rsqrt(jnp.maximum(jnp.sum(k * k, axis=-1, keepdims=True), 1e-24))

    logits = mm_nt(qn, kn)                      # (C, C), contraction over HW
    hm = hmask_ref[...]                         # 1.0 same head, 0.0 otherwise
    logits = logits * trow_ref[...]             # per-head temperature (row-wise)
    logits = logits * hm + (hm - 1.0) * 1e30    # mask off-head entries to -1e30

    m = jnp.max(logits, axis=-1, keepdims=True)
    e = jnp.exp(logits - m) * hm
    p = e * pl.reciprocal(jnp.sum(e, axis=-1, keepdims=True), approx=True)

    att = mm(p.astype(jnp.float32), v)          # (C, HW)

    # ---- fused output projection; lane-dense (C, HW) store ----
    o_ref[0] = mm(wp_ref[...], att) + bp_ref[...]


# --------------------------------------------------------------------------
# Wrapper: NCHW in / NCHW out, matches the PyTorch CAB module.
# --------------------------------------------------------------------------
def cab_forward(x_nchw, y_nchw, params, num_heads, matmul_dtype=jnp.float32):
    B, C, H, W = x_nchw.shape
    HW = H * W
    ch = C // num_heads

    # NCHW -> (B, C, HW): metadata-only reshape (no HBM transpose).
    x2 = x_nchw.reshape(B, C, HW)
    y2 = y_nchw.reshape(B, C, HW)

    # Weight re-layouts (tiny, weight-sized; split kv into k / v halves so the
    # kernel never slices activations).
    wq = params["wq"].reshape(C, C)
    bq = params["bq"].reshape(C, 1)
    wqdw = params["wq_dw"].reshape(C, 9)
    bqdw = params["bq_dw"].reshape(C, 1)
    wkv = params["wkv"].reshape(2 * C, C)
    bkv = params["bkv"].reshape(2 * C, 1)
    wkvdw = params["wkv_dw"].reshape(2 * C, 9)
    bkvdw = params["bkv_dw"].reshape(2 * C, 1)
    wk, wv = wkv[:C], wkv[C:]
    bk, bv = bkv[:C], bkv[C:]
    wkdw, wvdw = wkvdw[:C], wkvdw[C:]
    bkdw, bvdw = bkvdw[:C], bkvdw[C:]
    wp = params["wproj"].reshape(C, C)
    bp = params["bproj"].reshape(C, 1)

    # Per-row temperature and block-diagonal head mask (weight-sized constants).
    temp = params["temperature"].reshape(num_heads).astype(jnp.float32)
    t_row = jnp.repeat(temp, ch).reshape(C, 1)
    hid = jnp.arange(C) // ch
    hmask = (hid[:, None] == hid[None, :]).astype(jnp.float32)        # (C, C)

    # Boundary masks for the in-kernel depthwise conv (flattened HW layout).
    ii = jnp.arange(HW)
    rowi, coli = ii // W, ii % W
    masks = jnp.stack(
        [rowi > 0, rowi < H - 1, coli > 0, coli < W - 1]
    ).astype(jnp.float32)                                             # (4, HW)

    kern = functools.partial(
        _cab_fused_kernel, H=H, W=W,
        roll_like_jnp=_roll_like_jnp(), matmul_dtype=matmul_dtype)

    act_spec = pl.BlockSpec((1, C, HW), lambda b: (b, 0, 0))

    def const_spec(*shape):
        n = len(shape)
        return pl.BlockSpec(shape, lambda b: (0,) * n)

    flops = B * (12 * C * C * HW + 54 * C * HW)
    transcendentals = B * (C * C + 3 * C)
    bytes_accessed = 4 * (3 * B * C * HW + 4 * HW + 5 * C * C + 3 * 9 * C + 8 * C)

    out = pl.pallas_call(
        kern,
        out_shape=jax.ShapeDtypeStruct((B, C, HW), jnp.float32),
        grid=(B,),
        in_specs=[
            act_spec, act_spec,
            const_spec(4, HW),
            const_spec(C, C), const_spec(C, 1), const_spec(C, 9), const_spec(C, 1),
            const_spec(C, C), const_spec(C, 1), const_spec(C, 9), const_spec(C, 1),
            const_spec(C, C), const_spec(C, 1), const_spec(C, 9), const_spec(C, 1),
            const_spec(C, C), const_spec(C, 1),
            const_spec(C, 1), const_spec(C, C),
        ],
        out_specs=act_spec,
        compiler_params=pltpu.CompilerParams(
            dimension_semantics=("parallel",),
            vmem_limit_bytes=32 * 1024 * 1024,
        ),
        cost_estimate=pl.CostEstimate(
            flops=int(flops),
            transcendentals=int(transcendentals),
            bytes_accessed=int(bytes_accessed),
        ),
    )(x2, y2, masks,
      wq, bq, wqdw, bqdw,
      wk, bk, wkdw, bkdw,
      wv, bv, wvdw, bvdw,
      wp, bp, t_row, hmask)

    return out.reshape(B, C, H, W)


# --------------------------------------------------------------------------
# Pure-JAX reference (mirrors the PyTorch module exactly).
# --------------------------------------------------------------------------
def ref_forward(x, y, params, num_heads):
    B, C, H, W = x.shape

    def c1x1(t, w, b):
        return jnp.einsum("bchw,dc->bdhw", t, w) + b.reshape(1, -1, 1, 1)

    def dw3x3(t, w, b):
        Cc = t.shape[1]
        out = jax.lax.conv_general_dilated(
            t, w, (1, 1), ((1, 1), (1, 1)),
            dimension_numbers=("NCHW", "OIHW", "NCHW"),
            feature_group_count=Cc)
        return out + b.reshape(1, -1, 1, 1)

    q = dw3x3(c1x1(x, params["wq"], params["bq"]), params["wq_dw"], params["bq_dw"])
    kv = dw3x3(c1x1(y, params["wkv"], params["bkv"]), params["wkv_dw"], params["bkv_dw"])
    k, v = kv[:, :C], kv[:, C:]

    def heads(t):
        return t.reshape(B, num_heads, C // num_heads, H * W)

    def l2n(t):
        return t / jnp.maximum(jnp.linalg.norm(t, axis=-1, keepdims=True), 1e-12)

    qh, kh, vh = l2n(heads(q)), l2n(heads(k)), heads(v)
    attn = jnp.einsum("bhcs,bhds->bhcd", qh, kh)
    attn = attn * params["temperature"].reshape(1, num_heads, 1, 1)
    attn = jax.nn.softmax(attn, axis=-1)
    out = jnp.einsum("bhcd,bhds->bhcs", attn, vh).reshape(B, C, H, W)
    return c1x1(out, params["wproj"], params["bproj"])


# --------------------------------------------------------------------------
if __name__ == "__main__":
    B, C, H, W = 2, 8, 16, 16
    num_heads = 2

    key = jax.random.PRNGKey(0)
    ks = jax.random.split(key, 14)

    def init(k, shape, scale=0.1):
        return scale * jax.random.normal(k, shape, jnp.float32)

    params = {
        # torch-native layouts
        "wq": init(ks[0], (C, C)),
        "bq": init(ks[1], (C,)),
        "wq_dw": init(ks[2], (C, 1, 3, 3)),
        "bq_dw": init(ks[3], (C,)),
        "wkv": init(ks[4], (2 * C, C)),
        "bkv": init(ks[5], (2 * C,)),
        "wkv_dw": init(ks[6], (2 * C, 1, 3, 3)),
        "bkv_dw": init(ks[7], (2 * C,)),
        "wproj": init(ks[8], (C, C)),
        "bproj": init(ks[9], (C,)),
        # nn.Parameter(torch.ones(num_heads, 1, 1)); randomized to exercise it
        "temperature": jax.random.uniform(
            ks[12], (num_heads, 1, 1), jnp.float32, 0.5, 1.5),
    }

    x = jax.random.normal(ks[10], (B, C, H, W), jnp.float32)
    y = jax.random.normal(ks[11], (B, C, H, W), jnp.float32)

    # NOTE: pass matmul_dtype=jnp.bfloat16 on v6e/v7x for ~2x matmul/byte rate
    # (f32 accumulate + f32 elementwise are kept); f32 here for the strict check.
    out = jax.block_until_ready(cab_forward(x, y, params, num_heads))
    ref = jax.block_until_ready(ref_forward(x, y, params, num_heads))

    assert out.shape == (B, C, H, W)
    err = float(jnp.max(jnp.abs(out - ref)))
    assert jnp.allclose(out, ref, atol=3e-3, rtol=3e-3), f"max abs err {err}"

    print("KERNEL_OK")
</pallas_src>

<mosaic_0001>
module attributes {stable_mosaic.version = 11 : i64} {
  func.func @probe(%arg0: memref<8x128xf32, #tpu.memory_space<vmem>>, %arg1: memref<8x128xf32, #tpu.memory_space<vmem>>) attributes {dimension_semantics = [], scalar_prefetch = 0 : i64, scratch_operands = 0 : i64, tpu.core_type = #tpu.core_type<tc>} {
    %c0 = arith.constant 0 : index
    %c0_0 = arith.constant 0 : index
    %0 = vector.load %arg0[%c0, %c0_0] : memref<8x128xf32, #tpu.memory_space<vmem>>, vector<8x128xf32>
    %c1_i32 = arith.constant 1 : i32
    %1 = tpu.dynamic_rotate %0 by %c1_i32 dim 1 : vector<8x128xf32>, i32 -> vector<8x128xf32>
    %c0_1 = arith.constant 0 : index
    %c0_2 = arith.constant 0 : index
    %2 = vector.load %arg1[%c0_1, %c0_2] : memref<8x128xf32, #tpu.memory_space<vmem>>, vector<8x128xf32>
    tpu.vector_store %arg1[%c0_1, %c0_2], %1 {strides = array<i32>} : memref<8x128xf32, #tpu.memory_space<vmem>>, vector<8x128xf32>,
    return
  }
}

</mosaic_0001>

<bundles_post_ra>
// kernel: tpu_custom_call.1
= control target key start
LH: loop header
LB: loop body
LE: loop exit
PB: predicated region body
PF: predicated region fallthrough
CT: control target
= control target key end

     0   :  { %6 = vsyncpa [#allocation3], 0  ;;  %s128_s0 = inlined_call_operand.hbm [shape: f32[8,128], index: 0, kind: input, shape index: {}]   ;;  %s129_s1 = inlined_call_operand.hbm [shape: f32[8,128], index: 1, kind: output, shape index: {}]  }
   0x1   :  { %7 = vsyncpa [#allocation4], 0  ;;  %s91_s6 = smov [#allocation2]   ;;  %s43_s10 = scalar_lea.hbm %s128_s0, 128 }
   0x2   :  { %s14_s7 = sshll.u32 %s91_s6, 4  ;;  %p44_p0 = scmp.ne.s32.totalorder %s128_s0, %s43_s10  ;;  %s15_s7 = int_to_ptr.vmem [resolvable:$true] %s14_s7 }
   0x3   :  { %p47_p1 = scmp.lt.u32.totalorder %s43_s10, %s128_s0 }
   0x5   :  { %p49_p2 = pnand %p47_p1, %p44_p0 }
   0x7   :  { %52 = shalt.err (!%p49_p2)
}
   0x8   :  { %s53_s15 = scalar_lea.vmem %s15_s7, 128  ;;  %p58_p4 = scmp.lt.s32.totalorder %s15_s7, %s15_s7 }
   0x9   :  { %p54_p3 = scmp.ne.s32.totalorder %s15_s7, %s53_s15  ;;  %p59_p5 = scmp.lt.s32.totalorder %s53_s15, %s53_s15 }
   0xb   :  { %p60_p6 = por %p59_p5, %p58_p4 }
   0xd   :  { %p61_p7 = pnand %p60_p6, %p54_p3 }
   0xf   :  { %64 = shalt.err (!%p61_p7)
}
  0x10   :  { %17 = dma.hbm_to_vmem [thread:$0]  %s128_s0, 128, %s15_s7, [#allocation3]  }
  0x11   :  { %87 = dma.done.wait [#allocation3], 128  }
  0x12   :  { %88 = vsyncadd [#allocation3], 4294967168  ;;  %v21_v0 = vld [vmem:[#allocation2] sm:$0xff]  ;;  %s92_s18 = smov 1   ;;  %s93_s19 = smov [#allocation5]  }
  0x13   :  { %22 = vrot.lane.b32.xlu0 %v21_v0, %s92_s18  ;;  %s31_s20 = sshll.u32 %s93_s19, 4  ;;  %s32_s20 = int_to_ptr.vmem [resolvable:$true] %s31_s20 }
  0x14   :  { %s65_s21 = scalar_lea.vmem %s32_s20, 128  ;;  %p70_p9 = scmp.lt.s32.totalorder %s32_s20, %s32_s20 }
  0x15   :  { %p66_p8 = scmp.ne.s32.totalorder %s32_s20, %s65_s21  ;;  %p71_p10 = scmp.lt.s32.totalorder %s65_s21, %s65_s21 }
  0x17   :  { %p72_p11 = por %p71_p10, %p70_p9 }
  0x19   :  { %p73_p12 = pnand %p72_p11, %p66_p8 }
  0x85   :  { %v23_v1 = vpop.permute.xlu0 %22 }
  0x86   :  { %24 = vst [vmem:[#allocation5] sm:$0xff] %v23_v1 }
  0x87   :  { %76 = shalt.err (!%p73_p12)
}
  0x88   :  { %s77_s0 = scalar_lea.hbm %s129_s1, 128 }
  0x89   :  { %p78_p13 = scmp.ne.s32.totalorder %s129_s1, %s77_s0  ;;  %p81_p0 = scmp.lt.u32.totalorder %s77_s0, %s129_s1 }
  0x8b   :  { %p83_p1 = pnand %p81_p0, %p78_p13 }
  0x8d   :  { %86 = shalt.err (!%p83_p1)
}
  0x8e   :  { %34 = dma.vmem_to_hbm [thread:$0]  %s32_s20, 128, %s129_s1, [#allocation4]  }
  0x8f   :  { %89 = dma.done.wait [#allocation4], 128  }
  0x90   :  { %90 = vsyncadd [#allocation4], 4294967168 }
  0x91   :  { %38 = vsyncpa [#allocation3], 1 }
  0x92   :  { %39 = vsyncpa [#allocation4], 1 }

</bundles_post_ra>
